<compile_context>
chip_gen: v6e
topology: v6e:2x2x1
jax: 0.10.0
libtpu: 0.0.40
codegen_flags: <defaults>
</compile_context>

<pallas_src>
import jax
import jax.numpy as jnp
from jax.experimental import pallas as pl
from jax.experimental.pallas import tpu as pltpu


def _round_up(x, m):
    return ((x + m - 1) // m) * m


# ----------------------------------------------------------------------------
# Fused NodeAdd kernel: split-contraction Linear -> ReLU -> Linear
# ----------------------------------------------------------------------------
def node_add_kernel(hg_ref, c_ref, w1h_ref, w1c_ref, b1_ref, w2_ref, b2_ref,
                    out_ref):
    # Split contraction replaces concat([h_G, c], axis=1) @ W1 with two
    # accumulating MXU dots (identical math, no cross-lane relayout).
    s = (jnp.dot(hg_ref[...], w1h_ref[...], preferred_element_type=jnp.float32)
         + jnp.dot(c_ref[...], w1c_ref[...], preferred_element_type=jnp.float32)
         + b1_ref[...])
    s = jnp.maximum(s, 0.0)                                    # ReLU (VPU)
    out_ref[...] = (jnp.dot(s, w2_ref[...],
                            preferred_element_type=jnp.float32) + b2_ref[...])


def _pick_batch_tile(B, cap=1024):
    """Pad B to a multiple of 8 and pick a batch tile (multiple of 8, <= cap).
    For non-trivial batches, force >=2 grid steps so the 'parallel' axis can
    shard across v7x's two TensorCores."""
    Bp = max(_round_up(B, 8), 8)
    if Bp <= 8:
        tb = Bp
    elif Bp <= cap:
        tb = _round_up(pl.cdiv(Bp, 2), 8)
    else:
        tb = cap
    Bp = _round_up(Bp, tb)
    return Bp, tb


def node_add_forward(params, h_G, c):
    """NodeAdd.forward(h_G, c) -> logits of shape (B, num_node_atts)."""
    h_G = h_G.astype(jnp.float32)
    c = c.astype(jnp.float32)
    B, gdim = h_G.shape
    w1, b1, w2, b2 = params["w1"], params["b1"], params["w2"], params["b2"]
    K = w2.shape[1]

    # --- lane-dense zero padding (numerically exact; in production this is
    #     done once at parameter-load time, not per call) ----------------------
    Hp = _round_up(gdim, 128)   # padded hidden width of the first Linear
    Np = _round_up(K, 128)      # padded output width of the second Linear
    w1h = jnp.pad(w1[:gdim], ((0, 0), (0, Hp - gdim)))         # (gdim, Hp)
    w1c = jnp.pad(w1[gdim:], ((0, 0), (0, Hp - gdim)))         # (gdim, Hp)
    b1p = jnp.pad(b1, ((0, 0), (0, Hp - gdim)))                # (1, Hp)
    w2p = jnp.pad(w2, ((0, Hp - gdim), (0, Np - K)))           # (Hp, Np)
    b2p = jnp.pad(b2, ((0, 0), (0, Np - K)))                   # (1, Np)

    # --- batch tiling --------------------------------------------------------
    Bp, tb = _pick_batch_tile(B)
    hgp = jnp.pad(h_G, ((0, Bp - B), (0, 0)))
    cp = jnp.pad(c, ((0, Bp - B), (0, 0)))
    grid = (Bp // tb,)

    flops = 2 * Bp * gdim * Hp * 2 + 2 * Bp * Hp * Np
    bytes_accessed = 4 * (2 * Bp * gdim + 2 * gdim * Hp + Hp
                          + Hp * Np + Np + Bp * Np)

    # Conservative fully-double-buffered VMEM footprint; only raise the scoped
    # limit when the default (16 MiB v5e / 32 MiB v6e,v7x) would be exceeded.
    vmem_needed = int(4 * 2 * (2 * tb * gdim + 2 * gdim * Hp + Hp
                               + Hp * Np + Np + tb * Np) * 1.25) + (2 << 20)
    vmem_limit = min(vmem_needed, 64 << 20) if vmem_needed > (16 << 20) else None

    out = pl.pallas_call(
        node_add_kernel,
        out_shape=jax.ShapeDtypeStruct((Bp, Np), jnp.float32),
        grid=grid,
        in_specs=[
            pl.BlockSpec((tb, gdim), lambda i: (i, 0)),        # h_G batch tile
            pl.BlockSpec((tb, gdim), lambda i: (i, 0)),        # c   batch tile
            pl.BlockSpec((gdim, Hp), lambda i: (0, 0)),        # W1 (top half)
            pl.BlockSpec((gdim, Hp), lambda i: (0, 0)),        # W1 (bottom half)
            pl.BlockSpec((1, Hp), lambda i: (0, 0)),           # b1
            pl.BlockSpec((Hp, Np), lambda i: (0, 0)),          # W2 (padded)
            pl.BlockSpec((1, Np), lambda i: (0, 0)),           # b2 (padded)
        ],
        out_specs=pl.BlockSpec((tb, Np), lambda i: (i, 0)),    # lane-dense out
        compiler_params=pltpu.CompilerParams(
            dimension_semantics=("parallel",),
            vmem_limit_bytes=vmem_limit),
        cost_estimate=pl.CostEstimate(flops=flops, transcendentals=0,
                                      bytes_accessed=bytes_accessed),
    )(hgp, cp, w1h, w1c, b1p, w2p, b2p)

    return out[:B, :K]


# ----------------------------------------------------------------------------
# Parameter init (deterministic, synthetic) + pure-JAX reference
# ----------------------------------------------------------------------------
def init_params(key, gdim, num_node_atts):
    k1, k2, k3, k4 = jax.random.split(key, 4)
    return dict(
        # stored (in, out): kernel computes x @ W + b  (== torch x @ W.T + b)
        w1=0.1 * jax.random.normal(k1, (2 * gdim, gdim), jnp.float32),
        b1=0.1 * jax.random.normal(k2, (1, gdim), jnp.float32),
        w2=0.1 * jax.random.normal(k3, (gdim, num_node_atts), jnp.float32),
        b2=0.1 * jax.random.normal(k4, (1, num_node_atts), jnp.float32),
    )


def node_add_reference(params, h_G, c):
    x = jnp.concatenate([h_G, c], axis=1)
    s = jnp.maximum(
        jnp.dot(x, params["w1"], precision=jax.lax.Precision.HIGHEST)
        + params["b1"], 0.0)
    return (jnp.dot(s, params["w2"], precision=jax.lax.Precision.HIGHEST)
            + params["b2"])


# ----------------------------------------------------------------------------
if __name__ == "__main__":
    gdim = 16
    num_node_atts = 5

    key = jax.random.PRNGKey(0)
    kp, kh, kc = jax.random.split(key, 3)
    params = init_params(kp, gdim, num_node_atts)

    # Spec-sized case (B=2): single grid step, batch padded to 8 rows.
    B = 2
    h_G = jax.random.normal(kh, (B, gdim), jnp.float32)
    c = jax.random.normal(kc, (B, gdim), jnp.float32)
    out = jax.block_until_ready(node_add_forward(params, h_G, c))
    ref = jax.block_until_ready(node_add_reference(params, h_G, c))
    assert out.shape == (B, num_node_atts)
    assert jnp.allclose(out, ref, atol=1e-3, rtol=1e-3), "mismatch vs reference"

    # Ragged-batch case (B=19): exercises batch padding + 2-step parallel grid.
    B2 = 19
    h_G2 = jax.random.normal(kh, (B2, gdim), jnp.float32)
    c2 = jax.random.normal(kc, (B2, gdim), jnp.float32)
    out2 = jax.block_until_ready(node_add_forward(params, h_G2, c2))
    ref2 = jax.block_until_ready(node_add_reference(params, h_G2, c2))
    assert out2.shape == (B2, num_node_atts)
    assert jnp.allclose(out2, ref2, atol=1e-3, rtol=1e-3), "mismatch (B=19)"

    print("KERNEL_OK")
</pallas_src>

<mosaic_0001>
module attributes {stable_mosaic.version = 11 : i64} {
  func.func @node_add_kernel(%arg0: i32, %arg1: memref<8x16xf32, #tpu.memory_space<vmem>>, %arg2: memref<8x16xf32, #tpu.memory_space<vmem>>, %arg3: memref<16x128xf32, #tpu.memory_space<vmem>>, %arg4: memref<16x128xf32, #tpu.memory_space<vmem>>, %arg5: memref<1x128xf32, #tpu.memory_space<vmem>>, %arg6: memref<128x128xf32, #tpu.memory_space<vmem>>, %arg7: memref<1x128xf32, #tpu.memory_space<vmem>>, %arg8: memref<8x128xf32, #tpu.memory_space<vmem>>) attributes {dimension_semantics = [#tpu.dimension_semantics<parallel>], iteration_bounds = array<i64: 1>, scalar_prefetch = 0 : i64, scratch_operands = 0 : i64, tpu.core_type = #tpu.core_type<tc>, window_params = [{transform_indices = @transform_0, window_bounds = array<i64: 8, 16>}, {transform_indices = @transform_1, window_bounds = array<i64: 8, 16>}, {pipeline_mode = #tpu.pipeline_mode<synchronous>, transform_indices = @transform_2, window_bounds = array<i64: 16, 128>}, {pipeline_mode = #tpu.pipeline_mode<synchronous>, transform_indices = @transform_3, window_bounds = array<i64: 16, 128>}, {pipeline_mode = #tpu.pipeline_mode<synchronous>, transform_indices = @transform_4, window_bounds = array<i64: 1, 128>}, {pipeline_mode = #tpu.pipeline_mode<synchronous>, transform_indices = @transform_5, window_bounds = array<i64: 128, 128>}, {pipeline_mode = #tpu.pipeline_mode<synchronous>, transform_indices = @transform_6, window_bounds = array<i64: 1, 128>}, {transform_indices = @transform_7, window_bounds = array<i64: 8, 128>}]} {
    %c0 = arith.constant 0 : index
    %c0_0 = arith.constant 0 : index
    %0 = vector.load %arg1[%c0, %c0_0] : memref<8x16xf32, #tpu.memory_space<vmem>>, vector<8x16xf32>
    %c0_1 = arith.constant 0 : index
    %c0_2 = arith.constant 0 : index
    %1 = vector.load %arg3[%c0_1, %c0_2] : memref<16x128xf32, #tpu.memory_space<vmem>>, vector<16x128xf32>
    %cst = arith.constant dense<0.000000e+00> : vector<8x128xf32>
    %2 = tpu.matmul %0, %1, %cst {dimension_numbers = #tpu.dot_dimension_numbers<[1], [0], [0], [1], [0, 0, 1, 1], [], []>} : vector<8x16xf32>, vector<16x128xf32>, vector<8x128xf32> -> vector<8x128xf32>
    %c0_3 = arith.constant 0 : index
    %c0_4 = arith.constant 0 : index
    %3 = vector.load %arg2[%c0_3, %c0_4] : memref<8x16xf32, #tpu.memory_space<vmem>>, vector<8x16xf32>
    %c0_5 = arith.constant 0 : index
    %c0_6 = arith.constant 0 : index
    %4 = vector.load %arg4[%c0_5, %c0_6] : memref<16x128xf32, #tpu.memory_space<vmem>>, vector<16x128xf32>
    %cst_7 = arith.constant dense<0.000000e+00> : vector<8x128xf32>
    %5 = tpu.matmul %3, %4, %cst_7 {dimension_numbers = #tpu.dot_dimension_numbers<[1], [0], [0], [1], [0, 0, 1, 1], [], []>} : vector<8x16xf32>, vector<16x128xf32>, vector<8x128xf32> -> vector<8x128xf32>
    %6 = arith.addf %2, %5 : vector<8x128xf32>
    %c0_8 = arith.constant 0 : index
    %c0_9 = arith.constant 0 : index
    %7 = vector.load %arg5[%c0_8, %c0_9] : memref<1x128xf32, #tpu.memory_space<vmem>>, vector<1x128xf32>
    %8 = vector.broadcast %7 : vector<1x128xf32> to vector<8x128xf32>
    %9 = arith.addf %6, %8 : vector<8x128xf32>
    %cst_10 = arith.constant 0.000000e+00 : f32
    %10 = vector.broadcast %cst_10 : f32 to vector<8x128xf32>
    %11 = arith.maximumf %9, %10 : vector<8x128xf32>
    %c0_11 = arith.constant 0 : index
    %c0_12 = arith.constant 0 : index
    %12 = vector.load %arg6[%c0_11, %c0_12] : memref<128x128xf32, #tpu.memory_space<vmem>>, vector<128x128xf32>
    %cst_13 = arith.constant dense<0.000000e+00> : vector<8x128xf32>
    %13 = tpu.matmul %11, %12, %cst_13 {dimension_numbers = #tpu.dot_dimension_numbers<[1], [0], [0], [1], [0, 0, 1, 1], [], []>} : vector<8x128xf32>, vector<128x128xf32>, vector<8x128xf32> -> vector<8x128xf32>
    %c0_14 = arith.constant 0 : index
    %c0_15 = arith.constant 0 : index
    %14 = vector.load %arg7[%c0_14, %c0_15] : memref<1x128xf32, #tpu.memory_space<vmem>>, vector<1x128xf32>
    %15 = vector.broadcast %14 : vector<1x128xf32> to vector<8x128xf32>
    %16 = arith.addf %13, %15 : vector<8x128xf32>
    %c0_16 = arith.constant 0 : index
    %c0_17 = arith.constant 0 : index
    %17 = vector.load %arg8[%c0_16, %c0_17] : memref<8x128xf32, #tpu.memory_space<vmem>>, vector<8x128xf32>
    tpu.vector_store %arg8[%c0_16, %c0_17], %16 {strides = array<i32>} : memref<8x128xf32, #tpu.memory_space<vmem>>, vector<8x128xf32>,
    return
  }
  func.func @transform_0(%arg0: i32) -> (i32, i32) {
    %c0_i32 = arith.constant 0 : i32
    %c0_i32_0 = arith.constant 0 : i32
    return %arg0, %c0_i32 : i32, i32
  }
  func.func @transform_1(%arg0: i32) -> (i32, i32) {
    %c0_i32 = arith.constant 0 : i32
    %c0_i32_0 = arith.constant 0 : i32
    return %arg0, %c0_i32 : i32, i32
  }
  func.func @transform_2(%arg0: i32) -> (i32, i32) {
    %c0_i32 = arith.constant 0 : i32
    %c0_i32_0 = arith.constant 0 : i32
    %c0_i32_1 = arith.constant 0 : i32
    return %c0_i32, %c0_i32_0 : i32, i32
  }
  func.func @transform_3(%arg0: i32) -> (i32, i32) {
    %c0_i32 = arith.constant 0 : i32
    %c0_i32_0 = arith.constant 0 : i32
    %c0_i32_1 = arith.constant 0 : i32
    return %c0_i32, %c0_i32_0 : i32, i32
  }
  func.func @transform_4(%arg0: i32) -> (i32, i32) {
    %c0_i32 = arith.constant 0 : i32
    %c0_i32_0 = arith.constant 0 : i32
    %c0_i32_1 = arith.constant 0 : i32
    return %c0_i32, %c0_i32_0 : i32, i32
  }
  func.func @transform_5(%arg0: i32) -> (i32, i32) {
    %c0_i32 = arith.constant 0 : i32
    %c0_i32_0 = arith.constant 0 : i32
    %c0_i32_1 = arith.constant 0 : i32
    return %c0_i32, %c0_i32_0 : i32, i32
  }
  func.func @transform_6(%arg0: i32) -> (i32, i32) {
    %c0_i32 = arith.constant 0 : i32
    %c0_i32_0 = arith.constant 0 : i32
    %c0_i32_1 = arith.constant 0 : i32
    return %c0_i32, %c0_i32_0 : i32, i32
  }
  func.func @transform_7(%arg0: i32) -> (i32, i32) {
    %c0_i32 = arith.constant 0 : i32
    %c0_i32_0 = arith.constant 0 : i32
    return %arg0, %c0_i32 : i32, i32
  }
}

</mosaic_0001>

<bundles_post_ra>
// kernel: tpu_custom_call.1
= control target key start
LH: loop header
LB: loop body
LE: loop exit
PB: predicated region body
PF: predicated region fallthrough
CT: control target
= control target key end

     0   :  { %12 = vsyncpa [#allocation3], 0  ;;  %s689_s0 = inlined_call_operand.hbm [shape: f32[8,16], index: 0, kind: input, shape index: {}]   ;;  %s690_s1 = inlined_call_operand.hbm [shape: f32[8,16], index: 1, kind: input, shape index: {}]   ;;  %s691_s2 = inlined_call_operand.hbm [shape: f32[16,128], index: 2, kind: input, shape index: {}]   ;;  %s692_s3 = inlined_call_operand.hbm [shape: f32[16,128], index: 3, kind: input, shape index: {}]   ;;  %s693_s4 = inlined_call_operand.vmem [shape: f32[1,128], index: 4, kind: input, shape index: {}]   ;;  %s694_s5 = inlined_call_operand.hbm [shape: f32[128,128], index: 5, kind: input, shape index: {}]   ;;  %s695_s6 = inlined_call_operand.vmem [shape: f32[1,128], index: 6, kind: input, shape index: {}]   ;;  %s696_s7 = inlined_call_operand.hbm [shape: f32[8,128], index: 7, kind: output, shape index: {}]  }
   0x1   :  { %13 = vsyncpa [#allocation6], 0 }
   0x2   :  { %14 = vsyncpa [#allocation9], 0 }
   0x3   :  { %15 = vsyncpa [#allocation4], 0  ;;  %s578_s24 = smov [#allocation5]  }
   0x4   :  { %s32_s25 = sshll.u32 %s578_s24, 4  ;;  %s33_s25 = int_to_ptr.vmem [resolvable:$true] %s32_s25 }
   0x5   :  { %s458_s26 = scalar_lea.vmem %s33_s25, 128  ;;  %p463_p1 = scmp.lt.s32.totalorder %s33_s25, %s33_s25 }
   0x6   :  { %p459_p0 = scmp.ne.s32.totalorder %s33_s25, %s458_s26  ;;  %p464_p2 = scmp.lt.s32.totalorder %s458_s26, %s458_s26 }
   0x8   :  { %p465_p3 = por %p464_p2, %p463_p1 }
   0xa   :  { %p466_p4 = pnand %p465_p3, %p459_p0 }
   0xc   :  { %469 = shalt.err (!%p466_p4)
}
   0xd   :  { %35 = dma.hbm_to_vmem [thread:$0]  %s690_s1, 128, %s33_s25, [#allocation6]  }
   0xe   :  { %s579_s29 = smov [#allocation8]   ;;  %s580_s8 = smov [#allocation2]  }
   0xf   :  { %s53_s30 = sshll.u32 %s579_s29, 4  ;;  %s22_s9 = sshll.u32 %s580_s8, 4  ;;  %s54_s30 = int_to_ptr.vmem [resolvable:$true] %s53_s30  ;;  %s23_s9 = int_to_ptr.vmem [resolvable:$true] %s22_s9 }
  0x10   :  { %s478_s10 = scalar_lea.vmem %s54_s30, 256  ;;  %p483_p6 = scmp.lt.s32.totalorder %s54_s30, %s54_s30 }
  0x11   :  { %p479_p5 = scmp.ne.s32.totalorder %s54_s30, %s478_s10  ;;  %p484_p7 = scmp.lt.s32.totalorder %s478_s10, %s478_s10 }
  0x13   :  { %p485_p8 = por %p484_p7, %p483_p6 }
  0x15   :  { %p486_p9 = pnand %p485_p8, %p479_p5 }
  0x17   :  { %489 = shalt.err (!%p486_p9)
}
  0x18   :  { %s581_s11 = smov 128   ;;  %s582_s12 = smov 8  }
  0x19   :  { %59 = dma.hbm_to_vmem [thread:$0]  %s692_s3, 256, %s54_s30, [#allocation9], %s581_s11, %s581_s11, %s582_s12  }
  0x1a   :  { %s498_s1 = scalar_lea.vmem %s23_s9, 128  ;;  %p503_p11 = scmp.lt.s32.totalorder %s23_s9, %s23_s9 }
  0x1b   :  { %p499_p10 = scmp.ne.s32.totalorder %s23_s9, %s498_s1  ;;  %p504_p12 = scmp.lt.s32.totalorder %s498_s1, %s498_s1 }
  0x1d   :  { %p505_p13 = por %p504_p12, %p503_p11 }
  0x1f   :  { %p506_p0 = pnand %p505_p13, %p499_p10 }
  0x21   :  { %509 = shalt.err (!%p506_p0)
}
  0x22   :  { %25 = dma.hbm_to_vmem [thread:$0]  %s689_s0, 128, %s23_s9, [#allocation3]  }
  0x23   :  { %s583_s17 = smov [#allocation7]   ;;  %s584_s19 = smov [#allocation10]  }
  0x24   :  { %s41_s18 = sshll.u32 %s583_s17, 4  ;;  %s67_s20 = sshll.u32 %s584_s19, 4  ;;  %s42_s18 = int_to_ptr.vmem [resolvable:$true] %s41_s18  ;;  %s68_s20 = int_to_ptr.vmem [resolvable:$true] %s67_s20 }
  0x25   :  { %s518_s21 = scalar_lea.vmem %s42_s18, 256  ;;  %p523_p2 = scmp.lt.s32.totalorder %s42_s18, %s42_s18 }
  0x26   :  { %p519_p1 = scmp.ne.s32.totalorder %s42_s18, %s518_s21  ;;  %p524_p3 = scmp.lt.s32.totalorder %s518_s21, %s518_s21 }
  0x28   :  { %p525_p4 = por %p524_p3, %p523_p2 }
  0x2a   :  { %p526_p5 = pnand %p525_p4, %p519_p1 }
  0x2c   :  { %529 = shalt.err (!%p526_p5)
}
  0x2d   :  { %47 = dma.hbm_to_vmem [thread:$0]  %s691_s2, 256, %s42_s18, [#allocation6], %s581_s11, %s581_s11, %s582_s12  }
  0x2e   :  { %s538_s0 = scalar_lea.vmem %s68_s20, 2048  ;;  %p543_p7 = scmp.lt.s32.totalorder %s68_s20, %s68_s20 }
  0x2f   :  { %p539_p6 = scmp.ne.s32.totalorder %s68_s20, %s538_s0  ;;  %p544_p8 = scmp.lt.s32.totalorder %s538_s0, %s538_s0 }
  0x31   :  { %p545_p9 = por %p544_p8, %p543_p7 }
  0x33   :  { %p546_p10 = pnand %p545_p9, %p539_p6 }
  0x35   :  { %549 = shalt.err (!%p546_p10)
}
  0x36   :  { %73 = dma.hbm_to_vmem [thread:$0]  %s694_s5, 2048, %s68_s20, [#allocation9], %s581_s11, %s581_s11, %s582_s12  }
  0x37   :  { %570 = dma.done.wait [#allocation3], 128  }
  0x38   :  { %571 = vsyncadd [#allocation3], 4294967168 }
  0x39   :  { %572 = dma.done.wait [#allocation6], 384  }
  0x3a   :  { %573 = vsyncadd [#allocation6], 4294966912 }
  0x3b   :  { %574 = dma.done.wait [#allocation9], 2304  }
  0x3c   :  { %575 = vsyncadd [#allocation9], 4294964992  ;;  %v585_v0 = vmov 0.0   ;;  %vm586_vm0 = vmmov 0   ;;  %v96_v1 = vld [vmem:[#allocation8 + $0x8] sm:$0xff]  ;;  %v95_v2 = vld [vmem:[#allocation8] sm:$0xff] }
  0x3d   :  { %391 = vmatprep.subr.mxu1 %v585_v0  ;;  %395 = vmatprep.mubr.msk.f32.mxu1 %vm586_vm0, %v585_v0  ;;  %v94_v3 = vld [vmem:[#allocation5] sm:$0xff]  ;;  %vm97_vm1 = vcmask 130048   ;;  %v93_v4 = vld [vmem:[#allocation7 + $0x8] sm:$0xff]  ;;  %v92_v6 = vld [vmem:[#allocation7] sm:$0xff]  ;;  %s587_s27 = smov [#allocation11]  }
  0x3e   :  { %405 = vmatprep.subr.mxu0 %v585_v0  ;;  %437 = vmatprep.mubr.msk.f32.mxu0 %vm586_vm0, %v585_v0  ;;  %v268_v5 = vld [vmem:[#allocation10 + $0x78] sm:$0xff]  ;;  %v267_v7 = vld [vmem:[#allocation10 + $0x70] sm:$0xff]  ;;  %v266_v9 = vld [vmem:[#allocation10 + $0x68] sm:$0xff]  ;;  %s353_s28 = sshll.u32 %s587_s27, 4  ;;  %s354_s28 = int_to_ptr.vmem [resolvable:$true] %s353_s28 }
  0x3f   :  { %392 = vmatpush3.msra.mxu1 %v96_v1  ;;  %406 = vmatpush3.msra.mxu0 %v268_v5  ;;  %v91_v8 = vld [vmem:[#allocation2] sm:$0xff]  ;;  %v265_v10 = vld [vmem:[#allocation10 + $0x60] sm:$0xff]  ;;  %v264_v11 = vld [vmem:[#allocation10 + $0x58] sm:$0xff]  ;;  %s550_s29 = scalar_lea.vmem %s354_s28, 128  ;;  %p555_p12 = scmp.lt.s32.totalorder %s354_s28, %s354_s28 }
  0x40   :  { %393 = vmatprep.subr.mxu1 %v585_v0  ;;  %407 = vmatprep.subr.mxu0 %v585_v0  ;;  %v263_v12 = vld [vmem:[#allocation10 + $0x50] sm:$0xff]  ;;  %v262_v13 = vld [vmem:[#allocation10 + $0x48] sm:$0xff]  ;;  %v261_v14 = vld [vmem:[#allocation10 + $0x40] sm:$0xff]  ;;  %p551_p11 = scmp.ne.s32.totalorder %s354_s28, %s550_s29  ;;  %p556_p13 = scmp.lt.s32.totalorder %s550_s29, %s550_s29 }
  0x41   :  { %394 = vmatpush3.msra.mxu1 %v95_v2  ;;  %408 = vmatpush3.msra.mxu0 %v267_v7  ;;  %v260_v15 = vld [vmem:[#allocation10 + $0x38] sm:$0xff]  ;;  %v259_v16 = vld [vmem:[#allocation10 + $0x30] sm:$0xff]  ;;  %v258_v17 = vld [vmem:[#allocation10 + $0x28] sm:$0xff] }
  0x42   :  { %396 = vmatmul.mubr.msk.f32.vlgmr.msra.gmra.mxu1 %vm97_vm1, %v94_v3  ;;  %398 = vmatprep.subr.mxu1 %v585_v0  ;;  %v257_v18 = vld [vmem:[#allocation10 + $0x20] sm:$0xff]  ;;  %v256_v19 = vld [vmem:[#allocation10 + $0x18] sm:$0xff]  ;;  %v255_v20 = vld [vmem:[#allocation10 + $0x10] sm:$0xff]  ;;  %p557_p0 = por %p556_p13, %p555_p12 }
  0x43   :  { %399 = vmatpush3.msra.mxu1 %v93_v4  ;;  %402 = vmatprep.mubr.msk.f32.mxu1 %vm586_vm0, %v585_v0  ;;  %v254_v21 = vld [vmem:[#allocation10 + $0x8] sm:$0xff]  ;;  %v253_v22 = vld [vmem:[#allocation10] sm:$0xff]  ;;  %v366_v26 = vld [vmem:[%s693_s4] ss:$0 sm:$0xff] }
  0x44   :  { %400 = vmatprep.subr.mxu1 %v585_v0  ;;  %409 = vmatprep.subr.mxu0 %v585_v0  ;;  %v367_v31 = vld [vmem:[%s695_s6] ss:$0 sm:$0xff]  ;;  %p558_p1 = pnand %p557_p0, %p551_p11 }
  0x45   :  { %401 = vmatpush3.msra.mxu1 %v92_v6  ;;  %410 = vmatpush3.msra.mxu0 %v266_v9 }
  0x46   :  { %403 = vmatmul.mubr.msk.f32.vlgmr.msra.gmra.mxu1 %vm97_vm1, %v91_v8  ;;  %411 = vmatprep.subr.mxu0 %v585_v0 }
  0x47   :  { %412 = vmatpush3.msra.mxu0 %v265_v10 }
  0x48   :  { %413 = vmatprep.subr.mxu0 %v585_v0 }
  0x49   :  { %414 = vmatpush3.msra.mxu0 %v264_v11 }
  0x4a   :  { %415 = vmatprep.subr.mxu0 %v585_v0 }
  0x4b   :  { %416 = vmatpush3.msra.mxu0 %v263_v12 }
  0x4c   :  { %417 = vmatprep.subr.mxu0 %v585_v0 }
  0x4d   :  { %418 = vmatpush3.msra.mxu0 %v262_v13 }
  0x4e   :  { %419 = vmatprep.subr.mxu0 %v585_v0 }
  0x4f   :  { %420 = vmatpush3.msra.mxu0 %v261_v14 }
  0x50   :  { %421 = vmatprep.subr.mxu0 %v585_v0 }
  0x51   :  { %422 = vmatpush3.msra.mxu0 %v260_v15 }
  0x52   :  { %423 = vmatprep.subr.mxu0 %v585_v0 }
  0x53   :  { %424 = vmatpush3.msra.mxu0 %v259_v16 }
  0x54   :  { %425 = vmatprep.subr.mxu0 %v585_v0 }
  0x55   :  { %426 = vmatpush3.msra.mxu0 %v258_v17 }
  0x56   :  { %427 = vmatprep.subr.mxu0 %v585_v0 }
  0x57   :  { %428 = vmatpush3.msra.mxu0 %v257_v18 }
  0x58   :  { %429 = vmatprep.subr.mxu0 %v585_v0 }
  0x59   :  { %430 = vmatpush3.msra.mxu0 %v256_v19 }
  0x5a   :  { %431 = vmatprep.subr.mxu0 %v585_v0 }
  0x5b   :  { %432 = vmatpush3.msra.mxu0 %v255_v20 }
  0x5c   :  { %433 = vmatprep.subr.mxu0 %v585_v0 }
  0x5d   :  { %434 = vmatpush3.msra.mxu0 %v254_v21 }
  0x5e   :  { %435 = vmatprep.subr.mxu0 %v585_v0 }
  0x5f   :  { %436 = vmatpush3.msra.mxu0 %v253_v22 }
 0x102   :  { %v167_v23 = vpop.f32.mrf.mxu1 }
 0x104   :  { %v397_v24 = vpop.f32.mrf.mxu1 }
 0x106   :  { %v240_v25 = vpop.f32.mrf.mxu1 }
 0x107   :  { %v241_v27 = vadd.f32 %v240_v25, %v167_v23 }
 0x108   :  { %v404_v28 = vpop.f32.mrf.mxu1 }
 0x109   :  { %v251_v29 = vadd.f32 %v366_v26, %v241_v27 }
 0x10b   :  { %v252_v30 = vmax.f32 %v251_v29, 0.0 }
 0x10d   :  { %438 = vmatmul.mubr.f32.vlgmr.msra.gmra.mxu0 %v252_v30 }
 0x1cd   :  { %v342_v32 = vpop.f32.mrf.mxu0 }
 0x1ce   :  { %v343_v33 = vadd.f32 %v367_v31, %v342_v32 }
 0x1cf   :  { %v439_v34 = vpop.f32.mrf.mxu0 }
 0x1d0   :  { %346 = vst [vmem:[#allocation11] sm:$0xff] %v343_v33 }
 0x1d1   :  { %561 = shalt.err (!%p558_p1)
}
 0x1d2   :  { %356 = dma.vmem_to_hbm [thread:$0]  %s354_s28, 128, %s696_s7, [#allocation4]  }
 0x1d3   :  { %576 = dma.done.wait [#allocation4], 128  }
 0x1d4   :  { %577 = vsyncadd [#allocation4], 4294967168 }
 0x1d5   :  { %360 = vsyncpa [#allocation3], 1 }
 0x1d6   :  { %361 = vsyncpa [#allocation6], 1 }
 0x1d7   :  { %362 = vsyncpa [#allocation9], 1 }
 0x1d8   :  { %363 = vsyncpa [#allocation4], 1 }

</bundles_post_ra>
